<compile_context>
chip_gen: v7x
topology: tpu7x:2x2x1
jax: 0.10.0
libtpu: 0.0.40
codegen_flags: <defaults>
</compile_context>

<pallas_src>
import functools

import jax
import jax.numpy as jnp
from jax.experimental import pallas as pl
from jax.experimental.pallas import tpu as pltpu

HIDDEN = 64            # logical hidden width of the PyTorch module
LANE = 128             # TPU lane width; hidden/output padded to this in VMEM
NEG_BIG = -1e30        # bias for padded logit columns -> exp underflows to 0
MAX_TB = 2048          # batch-tile cap (rows per grid step)


# ----------------------------------------------------------------------------
# Kernel: one batch tile through the whole MLP.
# Shapes inside the kernel (per grid step):
#   x_ref : (TB, state_dim) f32     w1_ref: (state_dim, 128) f32   b1_ref: (1,128) f32
#   w2_ref: (128, 128) bf16         b2_ref: (1, 128) f32
#   w3_ref: (128, 128) bf16         b3_ref: (1, 128) f32 (NEG_BIG in pad cols)
#   o_ref : (TB, action_dim) f32
# ----------------------------------------------------------------------------
def policy_kernel(x_ref, w1_ref, b1_ref, w2_ref, b2_ref, w3_ref, b3_ref, o_ref):
    state_dim = x_ref.shape[-1]
    act_dim = o_ref.shape[-1]

    x = x_ref[...]                                       # (TB, S) f32

    # ---- Layer 1 on the VPU (K = state_dim is tiny; an MXU matmul would cost
    # a full TB/8 pushes while using <4% of the systolic array).
    acc = b1_ref[...]                                    # (1, LANE) f32
    for k in range(state_dim):                           # tiny static unroll
        acc = acc + x[:, k:k + 1] * w1_ref[k:k + 1, :]   # (TB,1)*(1,LANE)
    h1 = jnp.tanh(acc)                                   # (TB, LANE) f32

    # ---- Layers 2/3 on the MXU: bf16 operands, f32 accumulation.
    h2 = jnp.tanh(
        jnp.dot(h1.astype(jnp.bfloat16), w2_ref[...],
                preferred_element_type=jnp.float32) + b2_ref[...])
    logits = jnp.dot(h2.astype(jnp.bfloat16), w3_ref[...],
                     preferred_element_type=jnp.float32) + b3_ref[...]

    # ---- Numerically stable softmax over the 128 padded columns.  Padded
    # columns carry bias NEG_BIG so exp(logit - m) underflows to exactly 0
    # there and the normalization over the real action columns is unchanged.
    # Exact division (not the approx EUP reciprocal) so each row sums to 1
    # to f32 precision.
    m = jnp.max(logits, axis=-1, keepdims=True)
    e = jnp.exp(logits - m)
    denom = jnp.sum(e, axis=-1, keepdims=True)
    probs = e / denom

    # Narrow store: only the real action columns leave VMEM (masked vst, same
    # store-instruction count as the full-lane store, ~64x fewer HBM bytes).
    o_ref[...] = probs[:, :act_dim].astype(o_ref.dtype)


# ----------------------------------------------------------------------------
# One-time parameter preparation (store the result in the train state; do NOT
# call this per forward).  Pads to lane-dense layouts and casts the MXU
# weights to bf16.  Padded hidden units are inert (zero weights/biases,
# tanh(0)=0, zero outgoing rows); padded output columns get bias NEG_BIG.
# ----------------------------------------------------------------------------
def prepare_params(params):
    w1, b1 = params["w1"], params["b1"]
    w2, b2 = params["w2"], params["b2"]
    w3, b3 = params["w3"], params["b3"]
    state_dim = w1.shape[0]
    hidden = w1.shape[1]
    action_dim = w3.shape[1]
    assert hidden <= LANE and action_dim <= LANE

    def pad_to(a, rows, cols, fill=0.0, dtype=None):
        if dtype is None:
            dtype = a.dtype
        out = jnp.full((rows, cols), fill, dtype)
        return out.at[: a.shape[0], : a.shape[1]].set(a.astype(dtype))

    return {
        "w1": pad_to(w1, state_dim, LANE),                        # f32 (VPU path)
        "b1": pad_to(b1.reshape(1, -1), 1, LANE),
        "w2": pad_to(w2, LANE, LANE, dtype=jnp.bfloat16),         # bf16 MXU operand
        "b2": pad_to(b2.reshape(1, -1), 1, LANE),
        "w3": pad_to(w3, LANE, LANE, dtype=jnp.bfloat16),         # bf16 MXU operand
        "b3": pad_to(b3.reshape(1, -1), 1, LANE, fill=NEG_BIG),   # mask pad columns
        "action_dim": int(action_dim),
    }


def _round_up(n, m):
    return ((n + m - 1) // m) * m


def _select_tb(batch):
    rows = _round_up(max(int(batch), 1), 8)
    if rows <= 8:
        return 8
    # Prefer >= 2 grid steps so v7x's two TensorCores both get work
    # (harmless extra step on single-TC v5e/v6e).
    half = _round_up((rows + 1) // 2, 8)
    return int(min(MAX_TB, half))


@functools.partial(jax.jit, static_argnames=("tb", "action_dim"))
def _policy_forward(x, w1p, b1p, w2p, b2p, w3p, b3p, *, tb, action_dim):
    B, state_dim = x.shape
    grid = (pl.cdiv(B, tb),)

    def resident(shape):
        # Whole-array block, constant index_map: DMA'd once, VMEM-resident
        # across every grid step (never re-fetched).
        return pl.BlockSpec(shape, lambda i: (0, 0))

    return pl.pallas_call(
        policy_kernel,
        out_shape=jax.ShapeDtypeStruct((B, action_dim), jnp.float32),
        grid=grid,
        in_specs=[
            pl.BlockSpec((tb, state_dim), lambda i: (i, 0)),       # batch-tiled x
            resident((state_dim, LANE)), resident((1, LANE)),      # layer 1
            resident((LANE, LANE)),      resident((1, LANE)),      # layer 2
            resident((LANE, LANE)),      resident((1, LANE)),      # layer 3
        ],
        out_specs=pl.BlockSpec((tb, action_dim), lambda i: (i, 0)),  # narrow store
        compiler_params=pltpu.CompilerParams(
            dimension_semantics=("parallel",),
            vmem_limit_bytes=32 * 1024 * 1024,   # explicit; covers v5e's 16 MiB default
        ),
    )(x, w1p, b1p, w2p, b2p, w3p, b3p)


def policy_forward(x, prepared):
    """x: (B, state_dim) f32.  `prepared` = prepare_params(raw_params)."""
    tb = _select_tb(x.shape[0])
    return _policy_forward(
        x, prepared["w1"], prepared["b1"], prepared["w2"], prepared["b2"],
        prepared["w3"], prepared["b3"],
        tb=tb, action_dim=prepared["action_dim"],
    )


# ----------------------------------------------------------------------------
# Init mimicking PyTorch nn.Linear default (U(-1/sqrt(fan_in), +1/sqrt(fan_in)))
# with weights stored (in_features, out_features) so the kernel does x @ W + b.
# ----------------------------------------------------------------------------
def init_params(key, state_dim, action_dim, hidden=HIDDEN):
    ks = jax.random.split(key, 6)

    def linear(kw, kb, fan_in, fan_out):
        bound = 1.0 / jnp.sqrt(fan_in)
        w = jax.random.uniform(kw, (fan_in, fan_out), jnp.float32, -bound, bound)
        b = jax.random.uniform(kb, (1, fan_out), jnp.float32, -bound, bound)
        return w, b

    w1, b1 = linear(ks[0], ks[1], state_dim, hidden)
    w2, b2 = linear(ks[2], ks[3], hidden, hidden)
    w3, b3 = linear(ks[4], ks[5], hidden, action_dim)
    return {"w1": w1, "b1": b1, "w2": w2, "b2": b2, "w3": w3, "b3": b3}


def policy_reference(x, p):
    h1 = jnp.tanh(x @ p["w1"] + p["b1"])
    h2 = jnp.tanh(h1 @ p["w2"] + p["b2"])
    logits = h2 @ p["w3"] + p["b3"]
    return jax.nn.softmax(logits, axis=-1)


if __name__ == "__main__":
    key = jax.random.PRNGKey(0)
    k_x, k_p = jax.random.split(key)

    batch, state_dim, action_dim = 8, 4, 2  # CartPole-like dims
    x = jax.random.normal(k_x, (batch, state_dim), jnp.float32)
    params = init_params(k_p, state_dim, action_dim)

    prepared = prepare_params(params)       # one-time padding / bf16 cast
    out = policy_forward(x, prepared)
    out = jax.block_until_ready(out)

    ref = policy_reference(x, params)
    assert out.shape == (batch, action_dim)
    # bf16 MXU operands -> ~1e-3 typical prob error vs the f32 reference.
    assert jnp.allclose(out, ref, atol=1e-2, rtol=1e-2)
    # Exact division => rows sum to 1 to f32 precision.
    assert jnp.allclose(jnp.sum(out, axis=-1), 1.0, atol=1e-5)
    assert bool(jnp.all(out >= 0.0))

    print("KERNEL_OK")
</pallas_src>

<mosaic_0001>
module attributes {stable_mosaic.version = 11 : i64} {
  func.func @policy_kernel(%arg0: i32, %arg1: memref<8x4xf32, #tpu.memory_space<vmem>>, %arg2: memref<4x128xf32, #tpu.memory_space<vmem>>, %arg3: memref<1x128xf32, #tpu.memory_space<vmem>>, %arg4: memref<128x128xbf16, #tpu.memory_space<vmem>>, %arg5: memref<1x128xf32, #tpu.memory_space<vmem>>, %arg6: memref<128x128xbf16, #tpu.memory_space<vmem>>, %arg7: memref<1x128xf32, #tpu.memory_space<vmem>>, %arg8: memref<8x2xf32, #tpu.memory_space<vmem>>) attributes {dimension_semantics = [#tpu.dimension_semantics<parallel>], iteration_bounds = array<i64: 1>, scalar_prefetch = 0 : i64, scratch_operands = 0 : i64, tpu.core_type = #tpu.core_type<tc>, window_params = [{transform_indices = @transform_0, window_bounds = array<i64: 8, 4>}, {pipeline_mode = #tpu.pipeline_mode<synchronous>, transform_indices = @transform_1, window_bounds = array<i64: 4, 128>}, {pipeline_mode = #tpu.pipeline_mode<synchronous>, transform_indices = @transform_2, window_bounds = array<i64: 1, 128>}, {pipeline_mode = #tpu.pipeline_mode<synchronous>, transform_indices = @transform_3, window_bounds = array<i64: 128, 128>}, {pipeline_mode = #tpu.pipeline_mode<synchronous>, transform_indices = @transform_4, window_bounds = array<i64: 1, 128>}, {pipeline_mode = #tpu.pipeline_mode<synchronous>, transform_indices = @transform_5, window_bounds = array<i64: 128, 128>}, {pipeline_mode = #tpu.pipeline_mode<synchronous>, transform_indices = @transform_6, window_bounds = array<i64: 1, 128>}, {transform_indices = @transform_7, window_bounds = array<i64: 8, 2>}]} {
    %c0 = arith.constant 0 : index
    %c0_0 = arith.constant 0 : index
    %0 = vector.load %arg1[%c0, %c0_0] : memref<8x4xf32, #tpu.memory_space<vmem>>, vector<8x4xf32>
    %c0_1 = arith.constant 0 : index
    %c0_2 = arith.constant 0 : index
    %1 = vector.load %arg3[%c0_1, %c0_2] : memref<1x128xf32, #tpu.memory_space<vmem>>, vector<1x128xf32>
    %2 = vector.extract_strided_slice %0 {offsets = [0, 0], sizes = [8, 1], strides = [1, 1]} : vector<8x4xf32> to vector<8x1xf32>
    %c0_3 = arith.constant 0 : index
    %c0_4 = arith.constant 0 : index
    %3 = vector.load %arg2[%c0_3, %c0_4] : memref<4x128xf32, #tpu.memory_space<vmem>>, vector<1x128xf32>
    %4 = vector.broadcast %2 : vector<8x1xf32> to vector<8x128xf32>
    %5 = vector.broadcast %3 : vector<1x128xf32> to vector<8x128xf32>
    %6 = arith.mulf %4, %5 : vector<8x128xf32>
    %7 = vector.broadcast %1 : vector<1x128xf32> to vector<8x128xf32>
    %8 = arith.addf %7, %6 : vector<8x128xf32>
    %9 = vector.extract_strided_slice %0 {offsets = [0, 1], sizes = [8, 1], strides = [1, 1]} : vector<8x4xf32> to vector<8x1xf32>
    %c1 = arith.constant 1 : index
    %c0_5 = arith.constant 0 : index
    %10 = vector.load %arg2[%c1, %c0_5] : memref<4x128xf32, #tpu.memory_space<vmem>>, vector<1x128xf32>
    %11 = vector.broadcast %9 : vector<8x1xf32> to vector<8x128xf32>
    %12 = vector.broadcast %10 : vector<1x128xf32> to vector<8x128xf32>
    %13 = arith.mulf %11, %12 : vector<8x128xf32>
    %14 = arith.addf %8, %13 : vector<8x128xf32>
    %15 = vector.extract_strided_slice %0 {offsets = [0, 2], sizes = [8, 1], strides = [1, 1]} : vector<8x4xf32> to vector<8x1xf32>
    %c2 = arith.constant 2 : index
    %c0_6 = arith.constant 0 : index
    %16 = vector.load %arg2[%c2, %c0_6] : memref<4x128xf32, #tpu.memory_space<vmem>>, vector<1x128xf32>
    %17 = vector.broadcast %15 : vector<8x1xf32> to vector<8x128xf32>
    %18 = vector.broadcast %16 : vector<1x128xf32> to vector<8x128xf32>
    %19 = arith.mulf %17, %18 : vector<8x128xf32>
    %20 = arith.addf %14, %19 : vector<8x128xf32>
    %21 = vector.extract_strided_slice %0 {offsets = [0, 3], sizes = [8, 1], strides = [1, 1]} : vector<8x4xf32> to vector<8x1xf32>
    %c3 = arith.constant 3 : index
    %c0_7 = arith.constant 0 : index
    %22 = vector.load %arg2[%c3, %c0_7] : memref<4x128xf32, #tpu.memory_space<vmem>>, vector<1x128xf32>
    %23 = vector.broadcast %21 : vector<8x1xf32> to vector<8x128xf32>
    %24 = vector.broadcast %22 : vector<1x128xf32> to vector<8x128xf32>
    %25 = arith.mulf %23, %24 : vector<8x128xf32>
    %26 = arith.addf %20, %25 : vector<8x128xf32>
    %27 = math.tanh %26 : vector<8x128xf32>
    %28 = arith.truncf %27 : vector<8x128xf32> to vector<8x128xbf16>
    %c0_8 = arith.constant 0 : index
    %c0_9 = arith.constant 0 : index
    %29 = vector.load %arg4[%c0_8, %c0_9] : memref<128x128xbf16, #tpu.memory_space<vmem>>, vector<128x128xbf16>
    %cst = arith.constant dense<0.000000e+00> : vector<8x128xf32>
    %30 = tpu.matmul %28, %29, %cst {dimension_numbers = #tpu.dot_dimension_numbers<[1], [0], [0], [1], [0, 0, 1, 1], [], []>} : vector<8x128xbf16>, vector<128x128xbf16>, vector<8x128xf32> -> vector<8x128xf32>
    %c0_10 = arith.constant 0 : index
    %c0_11 = arith.constant 0 : index
    %31 = vector.load %arg5[%c0_10, %c0_11] : memref<1x128xf32, #tpu.memory_space<vmem>>, vector<1x128xf32>
    %32 = vector.broadcast %31 : vector<1x128xf32> to vector<8x128xf32>
    %33 = arith.addf %30, %32 : vector<8x128xf32>
    %34 = math.tanh %33 : vector<8x128xf32>
    %35 = arith.truncf %34 : vector<8x128xf32> to vector<8x128xbf16>
    %c0_12 = arith.constant 0 : index
    %c0_13 = arith.constant 0 : index
    %36 = vector.load %arg6[%c0_12, %c0_13] : memref<128x128xbf16, #tpu.memory_space<vmem>>, vector<128x128xbf16>
    %cst_14 = arith.constant dense<0.000000e+00> : vector<8x128xf32>
    %37 = tpu.matmul %35, %36, %cst_14 {dimension_numbers = #tpu.dot_dimension_numbers<[1], [0], [0], [1], [0, 0, 1, 1], [], []>} : vector<8x128xbf16>, vector<128x128xbf16>, vector<8x128xf32> -> vector<8x128xf32>
    %c0_15 = arith.constant 0 : index
    %c0_16 = arith.constant 0 : index
    %38 = vector.load %arg7[%c0_15, %c0_16] : memref<1x128xf32, #tpu.memory_space<vmem>>, vector<1x128xf32>
    %39 = vector.broadcast %38 : vector<1x128xf32> to vector<8x128xf32>
    %40 = arith.addf %37, %39 : vector<8x128xf32>
    %cst_17 = arith.constant dense<0xFF800000> : vector<8xf32>
    %41 = vector.multi_reduction <maximumf>, %40, %cst_17 [1] : vector<8x128xf32> to vector<8xf32>
    %42 = vector.shape_cast %41 : vector<8xf32> to vector<8x1xf32>
    %43 = vector.broadcast %42 : vector<8x1xf32> to vector<8x128xf32>
    %44 = arith.subf %40, %43 : vector<8x128xf32>
    %45 = math.exp %44 : vector<8x128xf32>
    %cst_18 = arith.constant dense<0.000000e+00> : vector<8xf32>
    %46 = vector.multi_reduction <add>, %45, %cst_18 [1] : vector<8x128xf32> to vector<8xf32>
    %47 = vector.shape_cast %46 : vector<8xf32> to vector<8x1xf32>
    %48 = vector.broadcast %47 : vector<8x1xf32> to vector<8x128xf32>
    %49 = arith.divf %45, %48 : vector<8x128xf32>
    %50 = vector.extract_strided_slice %49 {offsets = [0, 0], sizes = [8, 2], strides = [1, 1]} : vector<8x128xf32> to vector<8x2xf32>
    %c0_19 = arith.constant 0 : index
    %c0_20 = arith.constant 0 : index
    %51 = vector.load %arg8[%c0_19, %c0_20] : memref<8x2xf32, #tpu.memory_space<vmem>>, vector<8x2xf32>
    tpu.vector_store %arg8[%c0_19, %c0_20], %50 {strides = array<i32>} : memref<8x2xf32, #tpu.memory_space<vmem>>, vector<8x2xf32>,
    return
  }
  func.func @transform_0(%arg0: i32) -> (i32, i32) {
    %c0_i32 = arith.constant 0 : i32
    %c0_i32_0 = arith.constant 0 : i32
    return %arg0, %c0_i32 : i32, i32
  }
  func.func @transform_1(%arg0: i32) -> (i32, i32) {
    %c0_i32 = arith.constant 0 : i32
    %c0_i32_0 = arith.constant 0 : i32
    %c0_i32_1 = arith.constant 0 : i32
    return %c0_i32, %c0_i32_0 : i32, i32
  }
  func.func @transform_2(%arg0: i32) -> (i32, i32) {
    %c0_i32 = arith.constant 0 : i32
    %c0_i32_0 = arith.constant 0 : i32
    %c0_i32_1 = arith.constant 0 : i32
    return %c0_i32, %c0_i32_0 : i32, i32
  }
  func.func @transform_3(%arg0: i32) -> (i32, i32) {
    %c0_i32 = arith.constant 0 : i32
    %c0_i32_0 = arith.constant 0 : i32
    %c0_i32_1 = arith.constant 0 : i32
    return %c0_i32, %c0_i32_0 : i32, i32
  }
  func.func @transform_4(%arg0: i32) -> (i32, i32) {
    %c0_i32 = arith.constant 0 : i32
    %c0_i32_0 = arith.constant 0 : i32
    %c0_i32_1 = arith.constant 0 : i32
    return %c0_i32, %c0_i32_0 : i32, i32
  }
  func.func @transform_5(%arg0: i32) -> (i32, i32) {
    %c0_i32 = arith.constant 0 : i32
    %c0_i32_0 = arith.constant 0 : i32
    %c0_i32_1 = arith.constant 0 : i32
    return %c0_i32, %c0_i32_0 : i32, i32
  }
  func.func @transform_6(%arg0: i32) -> (i32, i32) {
    %c0_i32 = arith.constant 0 : i32
    %c0_i32_0 = arith.constant 0 : i32
    %c0_i32_1 = arith.constant 0 : i32
    return %c0_i32, %c0_i32_0 : i32, i32
  }
  func.func @transform_7(%arg0: i32) -> (i32, i32) {
    %c0_i32 = arith.constant 0 : i32
    %c0_i32_0 = arith.constant 0 : i32
    return %arg0, %c0_i32 : i32, i32
  }
}

</mosaic_0001>

<bundles_post_ra>
// kernel: _policy_forward.1
= control target key start
LH: loop header
LB: loop body
LE: loop exit
PB: predicated region body
PF: predicated region fallthrough
CT: control target
= control target key end

     0   :  { %12 = vsyncpa [#allocation3], 0  ;;  %s638_s0 = inlined_call_operand.vmem [shape: f32[8,4], index: 0, kind: input, shape index: {}]   ;;  %s639_s1 = inlined_call_operand.vmem [shape: f32[4,128], index: 1, kind: input, shape index: {}]   ;;  %s640_s2 = inlined_call_operand.vmem [shape: f32[1,128], index: 2, kind: input, shape index: {}]   ;;  %s641_s3 = inlined_call_operand.hbm [shape: bf16[128,128], index: 3, kind: input, shape index: {}]   ;;  %s642_s4 = inlined_call_operand.vmem [shape: f32[1,128], index: 4, kind: input, shape index: {}]   ;;  %s643_s5 = inlined_call_operand.hbm [shape: bf16[128,128], index: 5, kind: input, shape index: {}]   ;;  %s644_s6 = inlined_call_operand.vmem [shape: f32[1,128], index: 6, kind: input, shape index: {}]   ;;  %s645_s7 = inlined_call_operand.vmem [shape: f32[8,2], index: 7, kind: output, shape index: {}]  }
   0x1   :  { %13 = vsyncpa [#allocation5], 0  ;;  %s519_s24 = smov [#allocation2]   ;;  %s471_s28 = scalar_lea.hbm %s641_s3, 1024 }
   0x2   :  { %s25_s25 = sshll.u32 %s519_s24, 4  ;;  %p472_p0 = scmp.ne.s32.totalorder %s641_s3, %s471_s28  ;;  %s26_s25 = int_to_ptr.vmem [resolvable:$true] %s25_s25 }
   0x3   :  { %p475_p1 = scmp.lt.u32.totalorder %s471_s28, %s641_s3 }
   0x5   :  { %p477_p2 = pnand %p475_p1, %p472_p0 }
   0x7   :  { %480 = shalt.err (!%p477_p2)
}
   0x8   :  { %s481_s10 = scalar_lea.vmem %s26_s25, 1024  ;;  %p486_p4 = scmp.lt.s32.totalorder %s26_s25, %s26_s25 }
   0x9   :  { %p482_p3 = scmp.ne.s32.totalorder %s26_s25, %s481_s10  ;;  %p487_p5 = scmp.lt.s32.totalorder %s481_s10, %s481_s10 }
   0xb   :  { %p488_p6 = por %p487_p5, %p486_p4 }
   0xd   :  { %p489_p7 = pnand %p488_p6, %p482_p3 }
   0xf   :  { %492 = shalt.err (!%p489_p7)
}
  0x10   :  { %s520_s11 = smov 64   ;;  %s521_s12 = smov 4  }
  0x11   :  { %31 = dma.hbm_to_vmem [thread:$0]  %s641_s3, 1024, %s26_s25, [#allocation3], %s520_s11, %s520_s11, %s521_s12  }
  0x12   :  { %s522_s15 = smov [#allocation4]   ;;  %s493_s19 = scalar_lea.hbm %s643_s5, 1024 }
  0x13   :  { %s39_s16 = sshll.u32 %s522_s15, 4  ;;  %p494_p8 = scmp.ne.s32.totalorder %s643_s5, %s493_s19  ;;  %s40_s16 = int_to_ptr.vmem [resolvable:$true] %s39_s16 }
  0x14   :  { %p497_p9 = scmp.lt.u32.totalorder %s493_s19, %s643_s5 }
  0x16   :  { %p499_p10 = pnand %p497_p9, %p494_p8 }
  0x18   :  { %502 = shalt.err (!%p499_p10)
}
  0x19   :  { %s503_s24 = scalar_lea.vmem %s40_s16, 1024  ;;  %p508_p12 = scmp.lt.s32.totalorder %s40_s16, %s40_s16 }
  0x1a   :  { %p504_p11 = scmp.ne.s32.totalorder %s40_s16, %s503_s24  ;;  %p509_p13 = scmp.lt.s32.totalorder %s503_s24, %s503_s24 }
  0x1c   :  { %p510_p0 = por %p509_p13, %p508_p12 }
  0x1e   :  { %p511_p1 = pnand %p510_p0, %p504_p11 }
  0x20   :  { %514 = shalt.err (!%p511_p1)
}
  0x21   :  { %45 = dma.hbm_to_vmem [thread:$0]  %s643_s5, 1024, %s40_s16, [#allocation5], %s520_s11, %s520_s11, %s521_s12  }
  0x22   :  { %515 = dma.done.wait [#allocation3], 1024  }
  0x23   :  { %516 = vsyncadd [#allocation3], 4294966272 }
  0x24   :  { %517 = dma.done.wait [#allocation5], 1024  }
  0x25   :  { %518 = vsyncadd [#allocation5], 4294966272  ;;  %v523_v0 = vmov 0   ;;  %v524_v1 = vmov 2   ;;  %v525_v2 = vmov 0.0   ;;  %v55_v3 = vld [vmem:[%s638_s0] sm:$0xff] }
  0x26   :  { %442 = vset.pattern.permute.xlu0 %v523_v0  ;;  %444 = vset.pattern.permute.xlu1 %v524_v1  ;;  %v447_v4 = vld [vmem:[#allocation2] sm:$0xff]   ;;  %v448_v5 = vld [vmem:[#allocation2 + $0x8] sm:$0xff]   ;;  %v526_v6 = vmov 1   ;;  %v527_v7 = vmov 3   ;;  %v449_v8 = vld [vmem:[#allocation2 + $0x10] sm:$0xff]   ;;  %vm528_vm0 = vmmov 0  }
  0x27   :  { %392 = vmatprep.subr.bf16.mxu0 %v525_v2  ;;  %412 = vmatprep.subr.bf16.mxu1 %v525_v2  ;;  %v450_v9 = vld [vmem:[#allocation2 + $0x18] sm:$0xff]   ;;  %v451_v10 = vld [vmem:[#allocation2 + $0x20] sm:$0xff]   ;;  %v452_v11 = vld [vmem:[#allocation2 + $0x28] sm:$0xff]   ;;  %vm343_vm1 = vcmask 15360  }
  0x28   :  { %60 = vperm.xlu0 %442, %v55_v3   ;;  %88 = vperm.xlu1 %444, %v55_v3   ;;  %v453_v12 = vld [vmem:[#allocation2 + $0x30] sm:$0xff]   ;;  %v454_v13 = vld [vmem:[#allocation2 + $0x38] sm:$0xff]   ;;  %v455_v14 = vld [vmem:[#allocation4] sm:$0xff]  }
  0x29   :  { %393 = vmatpush3.bf16.msra.mxu0 %v447_v4  ;;  %408 = vmatprep.mubr.msk.bf16.mxu0 %vm528_vm0, %v525_v2  ;;  %v456_v15 = vld [vmem:[#allocation4 + $0x8] sm:$0xff]   ;;  %v457_v16 = vld [vmem:[#allocation4 + $0x10] sm:$0xff]   ;;  %v458_v17 = vld [vmem:[#allocation4 + $0x18] sm:$0xff]  }
  0x2a   :  { %394 = vmatprep.subr.bf16.mxu0 %v525_v2  ;;  %428 = vmatprep.mubr.msk.bf16.mxu1 %vm528_vm0, %v525_v2  ;;  %v351_v18 = vld [vmem:[%s639_s1] ss:$0 sm:$0xff]  ;;  %v353_v23 = vld [vmem:[%s639_s1 + $0x1] ss:$0 sm:$0xff]  ;;  %v354_v24 = vld [vmem:[%s639_s1 + $0x2] ss:$0 sm:$0xff] }
  0x2b   :  { %413 = vmatpush3.bf16.msra.mxu1 %v455_v14  ;;  %v352_v22 = vld [vmem:[%s640_s2] ss:$0 sm:$0xff]  ;;  %v355_v26 = vld [vmem:[%s639_s1 + $0x3] ss:$0 sm:$0xff]  ;;  %v460_v38 = vld [vmem:[#allocation4 + $0x28] sm:$0xff]  }
  0x2c   :  { %443 = vset.pattern.permute.xlu0 %v526_v6  ;;  %445 = vset.pattern.permute.xlu1 %v527_v7  ;;  %v459_v37 = vld [vmem:[#allocation4 + $0x20] sm:$0xff]   ;;  %v461_v39 = vld [vmem:[#allocation4 + $0x30] sm:$0xff]   ;;  %v462_v40 = vld [vmem:[#allocation4 + $0x38] sm:$0xff]  }
  0x2d   :  { %77 = vperm.xlu0 %443, %v55_v3   ;;  %99 = vperm.xlu1 %445, %v55_v3   ;;  %v356_v41 = vld [vmem:[%s642_s4] ss:$0 sm:$0xff] }
  0x2e   :  { %395 = vmatpush3.bf16.msra.mxu0 %v448_v5  ;;  %414 = vmatprep.subr.bf16.mxu1 %v525_v2  ;;  %v365_v49 = vld [vmem:[%s644_s6] ss:$0 sm:$0xff] }
  0x2f   :  { %396 = vmatprep.subr.bf16.mxu0 %v525_v2  ;;  %415 = vmatpush3.bf16.msra.mxu1 %v456_v15 }
  0x30   :  { %416 = vmatprep.subr.bf16.mxu1 %v525_v2 }
  0x31   :  { %446 = vset.pattern.permute.xlu0 %v527_v7 }
  0x32   :  { %397 = vmatpush3.bf16.msra.mxu0 %v449_v8 }
  0x33   :  { %398 = vmatprep.subr.bf16.mxu0 %v525_v2  ;;  %417 = vmatpush3.bf16.msra.mxu1 %v457_v16 }
  0x34   :  { %418 = vmatprep.subr.bf16.mxu1 %v525_v2 }
  0x36   :  { %399 = vmatpush3.bf16.msra.mxu0 %v450_v9 }
  0x37   :  { %400 = vmatprep.subr.bf16.mxu0 %v525_v2  ;;  %419 = vmatpush3.bf16.msra.mxu1 %v458_v17 }
  0x38   :  { %420 = vmatprep.subr.bf16.mxu1 %v525_v2 }
  0x3a   :  { %401 = vmatpush3.bf16.msra.mxu0 %v451_v10 }
  0x3b   :  { %402 = vmatprep.subr.bf16.mxu0 %v525_v2  ;;  %421 = vmatpush3.bf16.msra.mxu1 %v459_v37 }
  0x3c   :  { %422 = vmatprep.subr.bf16.mxu1 %v525_v2 }
  0x3e   :  { %403 = vmatpush3.bf16.msra.mxu0 %v452_v11 }
  0x3f   :  { %404 = vmatprep.subr.bf16.mxu0 %v525_v2  ;;  %423 = vmatpush3.bf16.msra.mxu1 %v460_v38 }
  0x40   :  { %424 = vmatprep.subr.bf16.mxu1 %v525_v2 }
  0x42   :  { %405 = vmatpush3.bf16.msra.mxu0 %v453_v12 }
  0x43   :  { %406 = vmatprep.subr.bf16.mxu0 %v525_v2  ;;  %425 = vmatpush3.bf16.msra.mxu1 %v461_v39 }
  0x44   :  { %426 = vmatprep.subr.bf16.mxu1 %v525_v2 }
  0x46   :  { %407 = vmatpush3.bf16.msra.mxu0 %v454_v13 }
  0x47   :  { %427 = vmatpush3.bf16.msra.mxu1 %v462_v40 }
  0xa7   :  { %v61_v19 = vpop.permute.xlu0 %60  ;;  %v89_v20 = vpop.permute.xlu1 %88 }
  0xa8   :  { %v67_v21 = vmul.f32 %v351_v18, %v61_v19  ;;  %v95_v30 = vmul.f32 %v354_v24, %v89_v20 }
  0xaa   :  { %v74_v28 = vadd.f32 %v352_v22, %v67_v21 }
  0xac   :  { %v78_v25 = vpop.permute.xlu0 %77  ;;  %v100_v27 = vpop.permute.xlu1 %99 }
  0xad   :  { %v84_v29 = vmul.f32 %v353_v23, %v78_v25  ;;  %v106_v32 = vmul.f32 %v355_v26, %v100_v27 }
  0xaf   :  { %v85_v31 = vadd.f32 %v84_v29, %v74_v28 }
  0xb1   :  { %v96_v33 = vadd.f32 %v95_v30, %v85_v31 }
  0xb3   :  { %v107_v34 = vadd.f32 %v106_v32, %v96_v33 }
  0xb5   :  { %463 = vtanh.f32 %v107_v34 }
  0xbf   :  { %v464_v35 = vpop.eup %463 }
  0xc0   :  { %v109_v36 = vpack.c.bf16 %v464_v35, %v464_v35 }
  0xc2   :  { %409 = vmatmul.mubr.bf16.vlgmr.msra.gmra.mrb[0].mxu0 %v109_v36 }
 0x195   :  { %v215_v42 = vpop.f32.mrb[0].mxu0 }
 0x196   :  { %v216_v43 = vadd.f32 %v356_v41, %v215_v42  ;;  %v410_v44 = vpop.f32.mrb[1].mxu0 }
 0x197   :  { %v218_v45 = vpop.f32.mrb[2].mxu0 }
 0x198   :  { %465 = vtanh.f32 %v216_v43  ;;  %v411_v46 = vpop.f32.mrb[3].mxu0 }
 0x1a2   :  { %v466_v47 = vpop.eup %465 }
 0x1a3   :  { %v222_v48 = vpack.c.bf16 %v466_v47, %v466_v47 }
 0x1a5   :  { %429 = vmatmul.mubr.bf16.vlgmr.msra.gmra.mrb[0].mxu1 %v222_v48 }
 0x278   :  { %v328_v50 = vpop.f32.mrb[0].mxu1 }
 0x279   :  { %v329_v51 = vadd.f32 %v365_v49, %v328_v50  ;;  %v430_v52 = vpop.f32.mrb[1].mxu1 }
 0x27a   :  { %v331_v53 = vpop.f32.mrb[2].mxu1 }
 0x27b   :  { %334 = vmax.xlane.f32.xlu1 %v329_v51  ;;  %v431_v54 = vpop.f32.mrb[3].mxu1 }
 0x308   :  { %v335_v55 = vpop.xlane.xlu1 %334 }
 0x309   :  { %v336_v56 = vsub.f32 %v329_v51, %v335_v55 }
 0x30b   :  { %v337_v57 = vmul.f32 1.442695, %v336_v56 }
 0x30d   :  { %467 = vpow2.f32 %v337_v57 }
 0x317   :  { %v468_v58 = vpop.eup %467 }
 0x318   :  { %339 = vadd.xlane.f32.xlu0 %v468_v58 }
 0x3a5   :  { %v340_v59 = vpop.xlane.xlu0 %339 }
 0x3a6   :  { %469 = vrcp.f32 %v340_v59 }
 0x3b0   :  { %v470_v60 = vpop.eup %469 }
 0x3b1   :  { %v342_v61 = vmul.f32 %v470_v60, %v468_v58 }
 0x3b3   :  { %344 = vst.msk [vmem:[%s645_s7] sm:$0xff] %vm343_vm1, %v342_v61 }
 0x3b4   :  { %349 = vsyncpa [#allocation3], 1 }
 0x3b5   :  { %350 = vsyncpa [#allocation5], 1 }

</bundles_post_ra>
